<compile_context>
chip_gen: v5e
topology: v5e:2x2
jax: 0.10.0
libtpu: 0.0.40
codegen_flags: <defaults>
</compile_context>

<pallas_src>
import jax
import jax.numpy as jnp
from jax.experimental import pallas as pl
from jax.experimental.pallas import tpu as pltpu


def svm_forward_kernel(x_ref, w_ref, b_ref, o_ref):
    # x_ref: (TM, D) VMEM; w_ref: (1, D) VMEM; b_ref: (1, 1) SMEM; o_ref: (1, TM) VMEM
    x = x_ref[...].astype(jnp.float32)          # cast in-kernel (no HBM f32 copy)
    w = w_ref[...].astype(jnp.float32)          # (1, D), broadcast over batch rows
    b = b_ref[0, 0]                             # scalar bias from SMEM

    # Linear layer: output feature dim is 1 -> VPU multiply + XLU lane reduce.
    # TODO(synk): for very large D, chunk this reduce with lax.fori_loop over
    #             128-lane slices into a (TM, 128) f32 accumulator (bounds vreg
    #             pressure) and add a K grid axis once one tile no longer fits VMEM.
    z = jnp.sum(x * w, axis=-1) + b             # (TM,) f32

    # Exact sigmoid: exp on the EUP; the lane-dense epilogue is negligible cost.
    o_ref[0, :] = 1.0 / (1.0 + jnp.exp(-z))


def _round_up(x, m):
    return ((x + m - 1) // m) * m


def _vmem_budget():
    """(per x-buffer byte budget, vmem_limit cap) gated on the TPU generation."""
    try:
        cap = int(getattr(pltpu.get_tpu_info(), "vmem_capacity_bytes", 64 << 20))
    except Exception:
        cap = 64 << 20
    if cap >= (96 << 20):            # v5e / v6e: 128 MiB physical VMEM
        return 20 << 20, 96 << 20
    return 12 << 20, 56 << 20        # v7x: 64 MiB per TensorCore


def _choose_tm(batch, feat, itemsize):
    x_buf_budget, vmem_cap = _vmem_budget()
    per_row = max(feat * itemsize, 1)
    # Largest lane-aligned (multiple-of-128-row) tile fitting the byte budget.
    tm = max(128, (x_buf_budget // per_row) // 128 * 128)
    # Use >= 2 grid blocks when the batch allows it, so the "parallel" batch
    # axis can shard tiles across both TensorCores on v7x.
    if batch >= 256:
        tm = min(tm, _round_up(-(-batch // 2), 128))
    if tm >= batch:
        # A single tile covers the whole batch: block shape equals the full
        # (8-row rounded) extent, so no lane/sublane alignment issue.
        tm = _round_up(batch, 8)
    return tm, vmem_cap


def svm_forward(x, weight, bias):
    """x: (B, D); weight: (1, D); bias: (1,) -> (B,) f32 probabilities."""
    B, D = x.shape
    x_bytes = jnp.dtype(x.dtype).itemsize
    w_bytes = jnp.dtype(weight.dtype).itemsize

    tm, vmem_cap = _choose_tm(B, D, x_bytes)
    n_blocks = -(-B // tm)                      # ragged last block handled by Pallas
    out_cols = n_blocks * tm

    bias2d = bias.reshape(1, 1).astype(jnp.float32)

    # Double-buffered x tiles + sublane-padded weight + (8, TM)-padded out tiles.
    vmem_needed = (2 * tm * D * x_bytes) + (2 * 8 * D * w_bytes) + (2 * 8 * tm * 4)
    vmem_limit = int(min(max(vmem_needed + (4 << 20), 16 << 20), vmem_cap))

    out = pl.pallas_call(
        svm_forward_kernel,
        out_shape=jax.ShapeDtypeStruct((1, out_cols), jnp.float32),
        grid=(n_blocks,),
        in_specs=[
            pl.BlockSpec((tm, D), lambda i: (i, 0)),               # x tiles (pipelined)
            pl.BlockSpec((1, D), lambda i: (0, 0)),                # weight (resident)
            pl.BlockSpec(memory_space=pltpu.MemorySpace.SMEM),     # bias scalar
        ],
        out_specs=pl.BlockSpec((1, tm), lambda i: (0, i)),         # lane-dense output
        compiler_params=pltpu.CompilerParams(
            dimension_semantics=("parallel",),   # shard batch tiles across TCs (v7x)
            vmem_limit_bytes=vmem_limit,
        ),
        cost_estimate=pl.CostEstimate(
            flops=2 * B * D + 3 * B,
            transcendentals=B,
            bytes_accessed=B * D * x_bytes + D * w_bytes + out_cols * 4,
        ),
    )(x, weight, bias2d)

    # torch .squeeze(): drop the size-1 feature dim; strip batch-tile padding.
    # TODO(synk): for D < 128 on v7x, pack r = 128 // D batch rows into the lane
    #             dim (wrapper reshape x -> (B/r, r*D), tile w, segmented reduce)
    #             to restore full 128-lane density of the input stream.
    return out.reshape(-1)[:B]


def init_linear_params(key, input_size):
    # Deterministic stand-in for torch.nn.Linear default init:
    # U(-1/sqrt(in), 1/sqrt(in)) for both weight (1, in) and bias (1,)
    kw, kb = jax.random.split(key)
    bound = 1.0 / jnp.sqrt(jnp.float32(input_size))
    weight = jax.random.uniform(kw, (1, input_size), jnp.float32, -bound, bound)
    bias = jax.random.uniform(kb, (1,), jnp.float32, -bound, bound)
    return weight, bias


if __name__ == "__main__":
    key = jax.random.PRNGKey(0)
    k_x, k_p = jax.random.split(key)

    batch, input_size = 8, 32
    x = jax.random.normal(k_x, (batch, input_size), jnp.float32)
    weight, bias = init_linear_params(k_p, input_size)

    out = svm_forward(x, weight, bias)
    jax.block_until_ready(out)

    # correctness check against plain-JAX reference
    ref = jax.nn.sigmoid(x @ weight.T + bias).squeeze()
    assert out.shape == (batch,)
    assert jnp.allclose(out, ref, atol=1e-4, rtol=1e-4)

    print("KERNEL_OK")
</pallas_src>

<mosaic_0001>
module attributes {stable_mosaic.version = 11 : i64} {
  func.func @svm_forward_kernel(%arg0: i32, %arg1: memref<8x32xf32, #tpu.memory_space<vmem>>, %arg2: memref<1x32xf32, #tpu.memory_space<vmem>>, %arg3: memref<1x1xf32, #tpu.memory_space<smem>>, %arg4: memref<1x8xf32, #tpu.memory_space<vmem>>) attributes {dimension_semantics = [#tpu.dimension_semantics<parallel>], iteration_bounds = array<i64: 1>, scalar_prefetch = 0 : i64, scratch_operands = 0 : i64, tpu.core_type = #tpu.core_type<tc>, window_params = [{transform_indices = @transform_0, window_bounds = array<i64: 8, 32>}, {pipeline_mode = #tpu.pipeline_mode<synchronous>, transform_indices = @transform_1, window_bounds = array<i64: 1, 32>}, {transform_indices = @transform_2, window_bounds = array<i64: 1, 1>}, {transform_indices = @transform_3, window_bounds = array<i64: 1, 8>}]} {
    %c0 = arith.constant 0 : index
    %c0_0 = arith.constant 0 : index
    %0 = vector.load %arg1[%c0, %c0_0] : memref<8x32xf32, #tpu.memory_space<vmem>>, vector<8x32xf32>
    %c0_1 = arith.constant 0 : index
    %c0_2 = arith.constant 0 : index
    %1 = vector.load %arg2[%c0_1, %c0_2] : memref<1x32xf32, #tpu.memory_space<vmem>>, vector<1x32xf32>
    %c0_3 = arith.constant 0 : index
    %c0_4 = arith.constant 0 : index
    %2 = memref.load %arg3[%c0_3, %c0_4] : memref<1x1xf32, #tpu.memory_space<smem>>
    %3 = vector.broadcast %1 : vector<1x32xf32> to vector<8x32xf32>
    %4 = arith.mulf %0, %3 : vector<8x32xf32>
    %cst = arith.constant dense<0.000000e+00> : vector<8xf32>
    %5 = vector.multi_reduction <add>, %4, %cst [1] : vector<8x32xf32> to vector<8xf32>
    %6 = vector.broadcast %2 : f32 to vector<8xf32>
    %7 = arith.addf %5, %6 : vector<8xf32>
    %cst_5 = arith.constant 0.000000e+00 : f32
    %8 = vector.broadcast %cst_5 : f32 to vector<8xf32>
    %9 = arith.subf %8, %7 : vector<8xf32>
    %10 = math.exp %9 : vector<8xf32>
    %cst_6 = arith.constant 1.000000e+00 : f32
    %11 = vector.broadcast %cst_6 : f32 to vector<8xf32>
    %12 = arith.addf %11, %10 : vector<8xf32>
    %cst_7 = arith.constant 1.000000e+00 : f32
    %13 = vector.broadcast %cst_7 : f32 to vector<8xf32>
    %14 = arith.divf %13, %12 : vector<8xf32>
    %c0_8 = arith.constant 0 : index
    %c0_9 = arith.constant 0 : index
    %15 = vector.load %arg4[%c0_8, %c0_9] : memref<1x8xf32, #tpu.memory_space<vmem>>, vector<1x8xf32>
    %16 = vector.shape_cast %15 : vector<1x8xf32> to vector<8xf32>
    %17 = vector.shape_cast %14 : vector<8xf32> to vector<1x8xf32>
    tpu.vector_store %arg4[%c0_8, %c0_9], %17 {strides = array<i32>} : memref<1x8xf32, #tpu.memory_space<vmem>>, vector<1x8xf32>,
    return
  }
  func.func @transform_0(%arg0: i32) -> (i32, i32) {
    %c0_i32 = arith.constant 0 : i32
    %c0_i32_0 = arith.constant 0 : i32
    return %arg0, %c0_i32 : i32, i32
  }
  func.func @transform_1(%arg0: i32) -> (i32, i32) {
    %c0_i32 = arith.constant 0 : i32
    %c0_i32_0 = arith.constant 0 : i32
    %c0_i32_1 = arith.constant 0 : i32
    return %c0_i32, %c0_i32_0 : i32, i32
  }
  func.func @transform_2(%arg0: i32) -> (i32, i32) {
    %c0_i32 = arith.constant 0 : i32
    %c0_i32_0 = arith.constant 0 : i32
    %c0_i32_1 = arith.constant 0 : i32
    return %c0_i32, %c0_i32_0 : i32, i32
  }
  func.func @transform_3(%arg0: i32) -> (i32, i32) {
    %c0_i32 = arith.constant 0 : i32
    %c0_i32_0 = arith.constant 0 : i32
    return %c0_i32, %arg0 : i32, i32
  }
}

</mosaic_0001>

<bundles_post_ra>
// kernel: tpu_custom_call.1
= control target key start
LH: loop header
LB: loop body
LE: loop exit
PB: predicated region body
PF: predicated region fallthrough
CT: control target
= control target key end

     0   :  { %9 = vsyncpa [#allocation4], 0  ;;  %s179_s0 = inlined_call_operand.hbm [shape: f32[8,32], index: 0, kind: input, shape index: {}]   ;;  %s180_s1 = inlined_call_operand.vmem [shape: f32[1,32], index: 1, kind: input, shape index: {}]   ;;  %s181_s2 = inlined_call_operand.<no memory space> [shape: f32[1,1], index: 2, kind: input, shape index: {}]   ;;  %s182_s3 = inlined_call_operand.hbm [shape: f32[1,8], index: 3, kind: output, shape index: {}]  }
   0x1   :  { %10 = vsyncpa [#allocation5], 0  ;;  %s16_s14 = sshll.u32 %s179_s0, 4  ;;  %s145_s15 = smov [#allocation3]   ;;  %s17_s14 = int_to_ptr.hbm [resolvable:$true] %s16_s14 }
   0x2   :  { %s18_s16 = sshll.u32 %s145_s15, 4  ;;  %s19_s16 = int_to_ptr.vmem [resolvable:$true] %s18_s16 }
   0x3   :  { %21 = dma.hbm_to_vmem [thread:$0]  %s17_s14, 128, %s19_s16, [#allocation4]  }
   0x4   :  { %141 = dma.done.wait [#allocation4], 128  }
   0x5   :  { %142 = vsyncadd [#allocation4], 4294967168  ;;  %v30_v0 = vld [vmem:[#allocation3] sm:$0xff]  ;;  %vm37_vm0 = vcmask 261120   ;;  %v41_v4 = vstv %s181_s2  ;;  %v63_v14 = vlaneseq  ;;  %s146_s0 = smov [#allocation6]   ;;  %s76_s22 = sshll.u32 %s182_s3, 4  ;;  %s77_s22 = int_to_ptr.hbm [resolvable:$true] %s76_s22 }
   0x6   :  { %v88_v1 = vld [vmem:[%s180_s1] ss:$0 sm:$0xff]  ;;  %s74_s1 = sshll.u32 %s146_s0, 4  ;;  %vm67_vm5 = vcmask 57344   ;;  %s75_s1 = int_to_ptr.vmem [resolvable:$true] %s74_s1 }
   0x7   :  { %v36_v2 = vmul.f32 %v88_v1, %v30_v0  ;;  %v64_v19 = vand.u32 127, %v63_v14 }
   0x9   :  { %v38_v3 = vsel %vm37_vm0, %v36_v2, 0.0 }
   0xa   :  { %39 = vadd.xlane.f32.xlu0 %v38_v3 }
  0x7d   :  { %v40_v5 = vpop.xlane.xlu0 %39 }
  0x7e   :  { %v42_v6 = vadd.f32 %v41_v4, %v40_v5 }
  0x80   :  { %v43_v7 = vsub.f32 0.0, %v42_v6 }
  0x82   :  { %v44_v8 = vmul.f32 1.442695, %v43_v7 }
  0x84   :  { %89 = vpow2.f32 %v44_v8 }
  0x8a   :  { %v90_v9 = vpop.eup %89 }
  0x8b   :  { %v46_v10 = vadd.f32 1.0, %v90_v9 }
  0x8d   :  { %91 = vrcp.f32 %v46_v10  ;;  %v58_v15 = vand.u32 2147483648, %v46_v10  ;;  %v56_v17 = vand.u32 2147483647, %v46_v10  ;;  %vm52_vm2 = vweird.f32 %v46_v10 }
  0x8f   :  { %v59_v20 = vor.u32 1.1754944e-38, %v58_v15  ;;  %vm57_vm4 = vcmp.eq.f32.partialorder %v56_v17, 8.507059e+37 }
  0x93   :  { %v92_v11 = vpop.eup %91 }
  0x94   :  { %v48_v12 = vmul.f32 %v92_v11, %v46_v10  ;;  %vm53_vm1 = vweird.f32 %v92_v11 }
  0x95   :  { %vm54_vm3 = vmor %vm52_vm2, %vm53_vm1 }
  0x96   :  { %v49_v13 = vsub.f32 1.0, %v48_v12 }
  0x98   :  { %v50_v16 = vmul.f32 %v92_v11, %v49_v13 }
  0x9a   :  { %v51_v18 = vadd.f32 %v92_v11, %v50_v16 }
  0x9c   :  { %v55_v21 = vsel %vm54_vm3, %v92_v11, %v51_v18 }
  0x9d   :  { %v60_v22 = vsel %vm57_vm4, %v59_v20, %v55_v21 }
  0x9e   :  { %v65_v23 = vperm.slane %v60_v22, %v64_v19 }
  0xa0   :  { %68 = vst.msk [vmem:[#allocation6] sm:$0x1] %vm67_vm5, %v65_v23 }
  0xa1   :  { %79 = dma.vmem_to_hbm [thread:$0]  %s75_s1, 16, %s77_s22, [#allocation5]  }
  0xa2   :  { %143 = dma.done.wait [#allocation5], 16  }
  0xa3   :  { %144 = vsyncadd [#allocation5], 4294967280 }
  0xa4   :  { %84 = vsyncpa [#allocation4], 1 }
  0xa5   :  { %85 = vsyncpa [#allocation5], 1 }

</bundles_post_ra>
